<compile_context>
chip_gen: v5e
topology: v5e:2x2
jax: 0.10.0
libtpu: 0.0.40
codegen_flags: <defaults>
</compile_context>

<pallas_src>
import functools
import math

import jax
import jax.numpy as jnp
from jax import lax
from jax.experimental import pallas as pl
from jax.experimental.pallas import tpu as pltpu


def _adaptive_conv_kernel(x_ref, k_ref, o_ref, *, K, strip):
    # x_ref: (TC, H+K-1, W+K-1)   per-(batch, channel-tile) input slab
    # k_ref: (K*K, H, W)          per-batch filter slab (resident across channel tiles)
    # o_ref: (TC, H, W)
    KK, H, W = k_ref.shape
    TC = o_ref.shape[0]
    S = strip
    n_strips = (H + S - 1) // S  # static

    def strip_body(s, carry):
        # Clamp the tail strip into bounds (overlapping rows recomputed; writes are idempotent).
        h0 = jnp.minimum(s * S, H - S)
        # Per-strip filter taps, cast once; reused by every channel in the tile.
        ks = k_ref[:, pl.ds(h0, S), :].astype(jnp.float32)          # (KK, S, W)

        def chan_body(c, carry2):
            # One row-band load per channel; everything below stays at vreg/strip scale,
            # so no full-slab VMEM copies and no materialized channel broadcasts.
            xs = x_ref[c, pl.ds(h0, S + K - 1), :].astype(jnp.float32)   # (S+K-1, Wp)
            acc = jnp.zeros((S, W), jnp.float32)
            for j in range(K):
                xj = xs[:, j:j + W]          # lane shift hoisted out of the i loop
                for i in range(K):
                    acc = acc + xj[i:i + S, :] * ks[i * K + j]
            o_ref[c, pl.ds(h0, S), :] = acc.astype(o_ref.dtype)
            return carry2

        return lax.fori_loop(0, TC, chan_body, carry, unroll=False)

    lax.fori_loop(0, n_strips, strip_body, 0, unroll=False)


def _vmem_capacity_bytes():
    """Generation-aware VMEM capacity; conservative (v7x, 64 MiB) fallback if unavailable."""
    try:
        info = pltpu.get_tpu_info()
        cap = getattr(info, "vmem_capacity_bytes", None)
        if cap:
            return int(cap)
    except Exception:
        pass
    return 64 * 1024 * 1024


def _pick_c_tile(B, C, Hp, Wp, H, W, KK, x_bytes, k_bytes, out_bytes, budget_bytes):
    """Largest channel tile whose double-buffered per-step working set fits the budget."""

    def working_set(tc):
        x_blk = tc * Hp * Wp * x_bytes
        o_blk = tc * H * W * out_bytes
        k_blk = KK * H * W * k_bytes
        scratch = 4 * 1024 * 1024  # strip-level temporaries + compiler scratch headroom
        return 2 * (x_blk + o_blk + k_blk) + scratch

    best = 1
    for tc in range(1, C + 1):
        if working_set(tc) <= budget_bytes:
            best = tc
    # v7x megacore: keep at least 2 grid steps so both TensorCores get work.
    if B == 1 and C > 1:
        best = min(best, -(-C // 2))
    return max(1, best)


def adaptive_conv(x, kernel, *, c_tile=None, vmem_limit_bytes=None):
    """x: (B, C, H+K-1, W+K-1), kernel: (B, K*K, H, W) -> (B, C, H, W)."""
    B, C, Hp, Wp = x.shape
    Bk, KK, H, W = kernel.shape
    K = math.isqrt(KK)
    assert K * K == KK
    assert B == Bk and Hp == H + K - 1 and Wp == W + K - 1

    out_dtype = kernel.dtype  # matches kernel.new_zeros(...) in the PyTorch module
    out_bytes = jnp.dtype(out_dtype).itemsize

    cap = _vmem_capacity_bytes()
    if vmem_limit_bytes is None:
        vmem_limit_bytes = min(int(cap * 0.75), cap - 8 * 1024 * 1024)
    budget = int(cap * 0.45)

    if c_tile is None:
        c_tile = _pick_c_tile(B, C, Hp, Wp, H, W, KK,
                              x.dtype.itemsize, kernel.dtype.itemsize,
                              out_bytes, budget)
    c_tile = max(1, min(c_tile, C))
    n_ctiles = pl.cdiv(C, c_tile)  # non-divisor C -> partial (masked) last block

    # Sublane strip for the in-kernel H loop (keeps per-strip temporaries at vreg scale).
    if H <= 8:
        strip = H
    elif W > 256 or H < 16:
        strip = 8
    else:
        strip = 16

    # TODO(synk): for very large H*W with tiny C (where even c_tile=1 overflows the budget),
    # add spatial H tiling with a (K-1)-row halo via manual DMA (prioritized for v7x's 64 MiB).
    # TODO(synk): single-buffer the per-batch filter slab (pipeline_mode=pl.Buffered(1)) to
    # reclaim one K*K*H*W buffer once buffer_count=1 is supported; it is never re-fetched
    # across the channel axis.

    flops = 2 * KK * B * C * H * W
    bytes_accessed = (x.size * x.dtype.itemsize
                      + kernel.size * kernel.dtype.itemsize
                      + B * C * H * W * out_bytes)

    out = pl.pallas_call(
        functools.partial(_adaptive_conv_kernel, K=K, strip=strip),
        out_shape=jax.ShapeDtypeStruct((B, C, H, W), out_dtype),
        grid=(B, n_ctiles),
        in_specs=[
            # x: channel-tiled slab at its natural width (no wrapper-side pad/slice HBM passes).
            pl.BlockSpec((None, c_tile, Hp, Wp), lambda b, c: (b, c, 0, 0)),
            # kernel: per-batch slab; block index constant over c -> stays resident.
            pl.BlockSpec((None, KK, H, W), lambda b, c: (b, 0, 0, 0)),
        ],
        out_specs=pl.BlockSpec((None, c_tile, H, W), lambda b, c: (b, c, 0, 0)),
        compiler_params=pltpu.CompilerParams(
            dimension_semantics=("parallel", "parallel"),
            vmem_limit_bytes=vmem_limit_bytes,
        ),
        cost_estimate=pl.CostEstimate(flops=flops, transcendentals=0,
                                      bytes_accessed=bytes_accessed),
    )(x, kernel)
    return out


def _reference(x, kernel):
    B, C, Hp, Wp = x.shape
    _, KK, H, W = kernel.shape
    K = math.isqrt(KK)
    out = jnp.zeros((B, C, H, W), jnp.float32)
    for i in range(K):
        for j in range(K):
            out = out + (x[:, :, i:i + H, j:j + W].astype(jnp.float32)
                         * kernel[:, i * K + j, None, :, :].astype(jnp.float32))
    return out.astype(kernel.dtype)


if __name__ == "__main__":
    B, C, H, W, K = 2, 4, 16, 16, 3
    key = jax.random.PRNGKey(0)
    kx, kk = jax.random.split(key)
    # x is the (valid-conv) padded input: spatial dims H+K-1, W+K-1
    x = jax.random.normal(kx, (B, C, H + K - 1, W + K - 1), dtype=jnp.float32)
    kernel = jax.random.normal(kk, (B, K * K, H, W), dtype=jnp.float32)

    out = jax.block_until_ready(adaptive_conv(x, kernel))

    ref = _reference(x, kernel)
    assert out.shape == (B, C, H, W)
    assert jnp.allclose(out, ref, atol=1e-5, rtol=1e-5)

    print("KERNEL_OK")
</pallas_src>

<mosaic_0001>
module attributes {stable_mosaic.version = 11 : i64} {
  func.func @_adaptive_conv_kernel(%arg0: i32, %arg1: i32, %arg2: memref<1x4x18x18xf32, #tpu.memory_space<vmem>>, %arg3: memref<1x9x16x16xf32, #tpu.memory_space<vmem>>, %arg4: memref<1x4x16x16xf32, #tpu.memory_space<vmem>>) attributes {dimension_semantics = [#tpu.dimension_semantics<parallel>, #tpu.dimension_semantics<parallel>], iteration_bounds = array<i64: 2, 1>, scalar_prefetch = 0 : i64, scratch_operands = 0 : i64, tpu.core_type = #tpu.core_type<tc>, window_params = [{transform_indices = @transform_0, window_bounds = array<i64: 1, 4, 18, 18>}, {transform_indices = @transform_1, window_bounds = array<i64: 1, 9, 16, 16>}, {transform_indices = @transform_2, window_bounds = array<i64: 1, 4, 16, 16>}]} {
    %c0_i32 = arith.constant 0 : i32
    %c16_i32 = arith.constant 16 : i32
    %0 = arith.muli %c0_i32, %c16_i32 : i32
    %c0_i32_0 = arith.constant 0 : i32
    %1 = arith.minsi %0, %c0_i32_0 : i32
    %c0 = arith.constant 0 : index
    %c0_1 = arith.constant 0 : index
    %2 = arith.index_cast %1 : i32 to index
    %c0_2 = arith.constant 0 : index
    %3 = vector.load %arg3[%c0, %c0_1, %2, %c0_2] : memref<1x9x16x16xf32, #tpu.memory_space<vmem>>, vector<1x9x16x16xf32>
    %4 = vector.shape_cast %3 : vector<1x9x16x16xf32> to vector<9x16x16xf32>
    %c0_i32_3 = arith.constant 0 : i32
    %c4_i32 = arith.constant 4 : i32
    %5 = arith.addi %c0_i32_3, %c4_i32 : i32
    %c1_i32 = arith.constant 1 : i32
    scf.for %arg5 = %c0_i32_3 to %5 step %c1_i32  : i32 {
      %c0_6 = arith.constant 0 : index
      %6 = arith.index_cast %arg5 : i32 to index
      %7 = arith.index_cast %1 : i32 to index
      %c0_7 = arith.constant 0 : index
      %8 = vector.load %arg2[%c0_6, %6, %7, %c0_7] : memref<1x4x18x18xf32, #tpu.memory_space<vmem>>, vector<1x1x18x18xf32>
      %9 = vector.shape_cast %8 : vector<1x1x18x18xf32> to vector<18x18xf32>
      %cst = arith.constant 0.000000e+00 : f32
      %10 = vector.broadcast %cst : f32 to vector<16x16xf32>
      %11 = vector.extract_strided_slice %9 {offsets = [0, 0], sizes = [18, 16], strides = [1, 1]} : vector<18x18xf32> to vector<18x16xf32>
      %12 = vector.extract_strided_slice %11 {offsets = [0, 0], sizes = [16, 16], strides = [1, 1]} : vector<18x16xf32> to vector<16x16xf32>
      %13 = vector.extract_strided_slice %4 {offsets = [0, 0, 0], sizes = [1, 16, 16], strides = [1, 1, 1]} : vector<9x16x16xf32> to vector<1x16x16xf32>
      %14 = vector.shape_cast %13 : vector<1x16x16xf32> to vector<16x16xf32>
      %15 = arith.mulf %12, %14 : vector<16x16xf32>
      %16 = arith.addf %10, %15 : vector<16x16xf32>
      %17 = vector.extract_strided_slice %11 {offsets = [1, 0], sizes = [16, 16], strides = [1, 1]} : vector<18x16xf32> to vector<16x16xf32>
      %18 = vector.extract_strided_slice %4 {offsets = [3, 0, 0], sizes = [1, 16, 16], strides = [1, 1, 1]} : vector<9x16x16xf32> to vector<1x16x16xf32>
      %19 = vector.shape_cast %18 : vector<1x16x16xf32> to vector<16x16xf32>
      %20 = arith.mulf %17, %19 : vector<16x16xf32>
      %21 = arith.addf %16, %20 : vector<16x16xf32>
      %22 = vector.extract_strided_slice %11 {offsets = [2, 0], sizes = [16, 16], strides = [1, 1]} : vector<18x16xf32> to vector<16x16xf32>
      %23 = vector.extract_strided_slice %4 {offsets = [6, 0, 0], sizes = [1, 16, 16], strides = [1, 1, 1]} : vector<9x16x16xf32> to vector<1x16x16xf32>
      %24 = vector.shape_cast %23 : vector<1x16x16xf32> to vector<16x16xf32>
      %25 = arith.mulf %22, %24 : vector<16x16xf32>
      %26 = arith.addf %21, %25 : vector<16x16xf32>
      %27 = vector.extract_strided_slice %9 {offsets = [0, 1], sizes = [18, 16], strides = [1, 1]} : vector<18x18xf32> to vector<18x16xf32>
      %28 = vector.extract_strided_slice %27 {offsets = [0, 0], sizes = [16, 16], strides = [1, 1]} : vector<18x16xf32> to vector<16x16xf32>
      %29 = vector.extract_strided_slice %4 {offsets = [1, 0, 0], sizes = [1, 16, 16], strides = [1, 1, 1]} : vector<9x16x16xf32> to vector<1x16x16xf32>
      %30 = vector.shape_cast %29 : vector<1x16x16xf32> to vector<16x16xf32>
      %31 = arith.mulf %28, %30 : vector<16x16xf32>
      %32 = arith.addf %26, %31 : vector<16x16xf32>
      %33 = vector.extract_strided_slice %27 {offsets = [1, 0], sizes = [16, 16], strides = [1, 1]} : vector<18x16xf32> to vector<16x16xf32>
      %34 = vector.extract_strided_slice %4 {offsets = [4, 0, 0], sizes = [1, 16, 16], strides = [1, 1, 1]} : vector<9x16x16xf32> to vector<1x16x16xf32>
      %35 = vector.shape_cast %34 : vector<1x16x16xf32> to vector<16x16xf32>
      %36 = arith.mulf %33, %35 : vector<16x16xf32>
      %37 = arith.addf %32, %36 : vector<16x16xf32>
      %38 = vector.extract_strided_slice %27 {offsets = [2, 0], sizes = [16, 16], strides = [1, 1]} : vector<18x16xf32> to vector<16x16xf32>
      %39 = vector.extract_strided_slice %4 {offsets = [7, 0, 0], sizes = [1, 16, 16], strides = [1, 1, 1]} : vector<9x16x16xf32> to vector<1x16x16xf32>
      %40 = vector.shape_cast %39 : vector<1x16x16xf32> to vector<16x16xf32>
      %41 = arith.mulf %38, %40 : vector<16x16xf32>
      %42 = arith.addf %37, %41 : vector<16x16xf32>
      %43 = vector.extract_strided_slice %9 {offsets = [0, 2], sizes = [18, 16], strides = [1, 1]} : vector<18x18xf32> to vector<18x16xf32>
      %44 = vector.extract_strided_slice %43 {offsets = [0, 0], sizes = [16, 16], strides = [1, 1]} : vector<18x16xf32> to vector<16x16xf32>
      %45 = vector.extract_strided_slice %4 {offsets = [2, 0, 0], sizes = [1, 16, 16], strides = [1, 1, 1]} : vector<9x16x16xf32> to vector<1x16x16xf32>
      %46 = vector.shape_cast %45 : vector<1x16x16xf32> to vector<16x16xf32>
      %47 = arith.mulf %44, %46 : vector<16x16xf32>
      %48 = arith.addf %42, %47 : vector<16x16xf32>
      %49 = vector.extract_strided_slice %43 {offsets = [1, 0], sizes = [16, 16], strides = [1, 1]} : vector<18x16xf32> to vector<16x16xf32>
      %50 = vector.extract_strided_slice %4 {offsets = [5, 0, 0], sizes = [1, 16, 16], strides = [1, 1, 1]} : vector<9x16x16xf32> to vector<1x16x16xf32>
      %51 = vector.shape_cast %50 : vector<1x16x16xf32> to vector<16x16xf32>
      %52 = arith.mulf %49, %51 : vector<16x16xf32>
      %53 = arith.addf %48, %52 : vector<16x16xf32>
      %54 = vector.extract_strided_slice %43 {offsets = [2, 0], sizes = [16, 16], strides = [1, 1]} : vector<18x16xf32> to vector<16x16xf32>
      %55 = vector.extract_strided_slice %4 {offsets = [8, 0, 0], sizes = [1, 16, 16], strides = [1, 1, 1]} : vector<9x16x16xf32> to vector<1x16x16xf32>
      %56 = vector.shape_cast %55 : vector<1x16x16xf32> to vector<16x16xf32>
      %57 = arith.mulf %54, %56 : vector<16x16xf32>
      %58 = arith.addf %53, %57 : vector<16x16xf32>
      %c0_8 = arith.constant 0 : index
      %59 = arith.index_cast %arg5 : i32 to index
      %60 = arith.index_cast %1 : i32 to index
      %c0_9 = arith.constant 0 : index
      %61 = vector.load %arg4[%c0_8, %59, %60, %c0_9] : memref<1x4x16x16xf32, #tpu.memory_space<vmem>>, vector<1x1x16x16xf32>
      %62 = vector.shape_cast %61 : vector<1x1x16x16xf32> to vector<16x16xf32>
      %63 = vector.shape_cast %58 : vector<16x16xf32> to vector<1x1x16x16xf32>
      tpu.vector_store %arg4[%c0_8, %59, %60, %c0_9], %63 {strides = array<i32>} : memref<1x4x16x16xf32, #tpu.memory_space<vmem>>, vector<1x1x16x16xf32>,
    }
    %c4_i32_4 = arith.constant 4 : i32
    %c1_i32_5 = arith.constant 1 : i32
    return
  }
  func.func @transform_0(%arg0: i32, %arg1: i32) -> (i32, i32, i32, i32) {
    %c0_i32 = arith.constant 0 : i32
    %c0_i32_0 = arith.constant 0 : i32
    %c0_i32_1 = arith.constant 0 : i32
    return %arg0, %arg1, %c0_i32, %c0_i32_0 : i32, i32, i32, i32
  }
  func.func @transform_1(%arg0: i32, %arg1: i32) -> (i32, i32, i32, i32) {
    %c0_i32 = arith.constant 0 : i32
    %c0_i32_0 = arith.constant 0 : i32
    %c0_i32_1 = arith.constant 0 : i32
    %c0_i32_2 = arith.constant 0 : i32
    return %arg0, %c0_i32, %c0_i32_0, %c0_i32_1 : i32, i32, i32, i32
  }
  func.func @transform_2(%arg0: i32, %arg1: i32) -> (i32, i32, i32, i32) {
    %c0_i32 = arith.constant 0 : i32
    %c0_i32_0 = arith.constant 0 : i32
    %c0_i32_1 = arith.constant 0 : i32
    return %arg0, %arg1, %c0_i32, %c0_i32_0 : i32, i32, i32, i32
  }
}

</mosaic_0001>

<bundles_post_ra>
// kernel: tpu_custom_call.1
= control target key start
LH: loop header
LB: loop body
LE: loop exit
PB: predicated region body
PF: predicated region fallthrough
CT: control target
= control target key end

     0   :  { %7 = vsyncpa [#allocation3], 0  ;;  %s1006_s0 = inlined_call_operand.vmem [shape: f32[2,4,18,18], index: 0, kind: input, shape index: {}]   ;;  %s1007_s1 = inlined_call_operand.vmem [shape: f32[2,9,16,16], index: 1, kind: input, shape index: {}]   ;;  %s1008_s2 = inlined_call_operand.hbm [shape: f32[2,4,16,16], index: 2, kind: output, shape index: {}]  }
   0x1   :  { %9 = vsyncpa [#allocation3 + $0x1], 0  ;;  %s773_s9 = smov 0   ;;  %s775_s10 = smov 0  }
   0x2   :  { %s777_s11 = smov 0   ;;  %s779_s12 = smov 0  }
   0x3   :  { %s781_s13 = smov 0   ;;  %s783_s14 = smov 0  }
   0x4 LB: > { %s578_s15 = sadd.s32 4294967295, %s746_s14   ;;  %s579_s16 = sadd.s32 4294967294, %s746_s14   ;;  %s746_s14 = sphi %s783_s14, %s15_s14   ;;  %s742_s13 = sphi %s781_s13, %s1015_s13   ;;  %s738_s12 = sphi %s779_s12, %s1014_s12   ;;  %s734_s11 = sphi %s777_s11, %s1013_s11   ;;  %s730_s10 = sphi %s775_s10, %s1012_s10   ;;  %s726_s9 = sphi %s773_s9, %s1011_s9  }
   0x5   : > { %s27_s17 = sadd.s32 1, %s742_s13  ;;  %s90_s18 = sadd.s32 1, %s734_s11 }
   0x6   : > { %p29_p0 = scmp.ge.s32.totalorder %s27_s17, 2  ;;  %p100_p1 = scmp.ne.s32.totalorder %s734_s11, %s730_s10 }
   0x7   : > { %p101_p2 = scmp.eq.s32.totalorder %s578_s15, 1  ;;  %p106_p3 = scmp.ne.s32.totalorder %s730_s10, %s726_s9 }
   0x8   : > { %s1017_s17 = smov (%p29_p0, %s27_s17), 0  ;;  %p107_p5 = scmp.eq.s32.totalorder %s579_s16, 1 }
   0x9   : > { %p813_p4 = por %p101_p2, %p100_p1  ;;  %s85_s20 = ssub.s32 %s742_s13, %s1017_s17 }
   0xa   : > { %p582_p6 = scmp.ge.s32.totalorder %s746_s14, 1  ;;  %p88_p7 = scmp.eq.s32.totalorder %s85_s20, 0 }
   0xb   : > { %p820_p8 = por %p107_p5, %p106_p3  ;;  %p147_p9 = scmp.lt.s32.totalorder %s746_s14, 3 }
   0xc   : > { %s826_s22 = scalar_select %p88_p7, %s734_s11, %s90_s18  }
   0xd   : > { %p148_p10 = pnand %p582_p6, %p147_p9 }
   0xe   : > { %s176_s23 = sand.u32 (!%p148_p10), 1, %s730_s10   ;;  %p180_p11 = scmp.lt.s32.totalorder (!%p148_p10), %s738_s12, 1 }
   0xf   : > { %151 = sbr.rel (%p148_p10) target bundleno = 315 (0x13b), region = 28  ;;  %s832_s24 = sshll.u32 (!%p148_p10), %s176_s23, 6 }
  0x10   : > { %s178_s6 = scalar_lea.vmem (!%p148_p10), [#allocation2], %s832_s24  ;;  %s880_s7 = smov (!%p148_p10), 0  }
  0x14   : > { %s181_s25 = scalar_select %p180_p11, %s738_s12, 1 }
  0x16   : > { %s593_s26 = smul.u32 96, %s181_s25 }
  0x17   : > { %s594_s27 = smul.u32 144, %s181_s25 }
  0x18   : > { %s838_s30 = scalar_lea.vmem %s1006_s0, %s593_s26 }
  0x19   : > { %s194_s5 = scalar_lea.vmem %s1007_s1, %s594_s27 }
  0x1a   : > { %v843_v0 = vld [vmem:[%s194_s5] sm:$0xff]  ;;  %v845_v1 = vld [vmem:[%s194_s5 + $0x8] sm:$0xff]  ;;  %v847_v2 = vld [vmem:[%s194_s5 + $0x10] sm:$0xff] }
  0x1b   : > { %v849_v3 = vld [vmem:[%s194_s5 + $0x18] sm:$0xff]  ;;  %v851_v4 = vld [vmem:[%s194_s5 + $0x20] sm:$0xff]  ;;  %v853_v5 = vld [vmem:[%s194_s5 + $0x28] sm:$0xff] }
  0x1c   : > { %v855_v6 = vld [vmem:[%s194_s5 + $0x30] sm:$0xff]  ;;  %v857_v7 = vld [vmem:[%s194_s5 + $0x38] sm:$0xff]  ;;  %v859_v8 = vld [vmem:[%s194_s5 + $0x40] sm:$0xff] }
  0x1d   : > { %v861_v9 = vld [vmem:[%s194_s5 + $0x48] sm:$0xff]  ;;  %v863_v10 = vld [vmem:[%s194_s5 + $0x50] sm:$0xff]  ;;  %v865_v11 = vld [vmem:[%s194_s5 + $0x58] sm:$0xff] }
  0x1e   : > { %v867_v12 = vld [vmem:[%s194_s5 + $0x60] sm:$0xff]  ;;  %v869_v13 = vld [vmem:[%s194_s5 + $0x68] sm:$0xff]  ;;  %v871_v14 = vld [vmem:[%s194_s5 + $0x70] sm:$0xff] }
  0x1f   : > { %v873_v15 = vld [vmem:[%s194_s5 + $0x78] sm:$0xff]  ;;  %v875_v16 = vld [vmem:[%s194_s5 + $0x80] sm:$0xff]  ;;  %v877_v17 = vld [vmem:[%s194_s5 + $0x88] sm:$0xff] }
  0x20 LB: >> { %v302_v18 = vrot.slane %v861_v9, 7  ;;  %v301_v19 = vrot.slane %v859_v8, 7  ;;  %s752_s8 = smov 1   ;;  %vm231_vm0 = vcmask 1040384   ;;  %v334_v21 = vrot.slane %v871_v14, 6  ;;  %s753_s15 = smov 2   ;;  %s750_s7 = sphi %s880_s7, %s219_s7  }
  0x21   : >> { %283 = vrot.lane.b32.xlu2 %v849_v3, %s752_s8  ;;  %v335_v22 = vrot.slane %v873_v15, 6  ;;  %vm256_vm1 = vcmask 1041408   ;;  %v387_v24 = vrot.slane %v863_v10, 7  ;;  %v388_v25 = vrot.slane %v865_v11, 7  ;;  %s220_s16 = smul.u32 24, %s750_s7  ;;  %s754_s20 = smov 127  }
  0x22   : >> { %308 = vrot.lane.b32.xlu1 %v302_v18, %s752_s8  ;;  %304 = vrot.lane.b32.xlu0 %v301_v19, %s752_s8  ;;  %v303_v20 = vsel %vm231_vm0, %v301_v19, %v302_v18  ;;  %v420_v27 = vrot.slane %v875_v16, 6  ;;  %v421_v28 = vrot.slane %v877_v17, 6  ;;  %vm244_vm2 = vcmask 1046528   ;;  %s755_s25 = smov 126   ;;  %s586_s26 = sshll.u32 %s750_s7, 4 }
  0x23   : >> { %v336_v23 = vsel %vm256_vm1, %v334_v21, %v335_v22  ;;  %v389_v26 = vsel %vm231_vm0, %v387_v24, %v388_v25  ;;  %s221_s18 = scalar_lea.vmem %s838_s30, %s220_s16  ;;  %vm269_vm3 = vcmask 1045504   ;;  %v232_v56 = vrot.slane %v855_v6, 7  ;;  %s452_s27 = scalar_lea.vmem %s178_s6, %s586_s26 [#allocation2] }
  0x24   : >> { %v422_v29 = vsel %vm256_vm1, %v420_v27, %v421_v28  ;;  %v903_v30 = vld [vmem:[%s221_s18 + $0x8] sm:$0xff]  ;;  %v909_v37 = vld [vmem:[%s221_s18] sm:$0xff]  ;;  %v224_v47 = vld [vmem:[%s221_s18 + $0x10] sm:$0x3]  ;;  %v233_v57 = vrot.slane %v857_v7, 7  ;;  %v257_v58 = vrot.slane %v867_v12, 6 }
  0x25   : >> { %v258_v59 = vrot.slane %v869_v13, 6  ;;  %vm453_vm4 = vcmask 130048   ;;  %s219_s7 = sadd.s32 1, %s750_s7  }
  0x26   : >> { %v234_v19 = vsel %vm231_vm0, %v232_v56, %v233_v57  ;;  %p216_p12 = scmp.ge.s32.totalorder %s219_s7, 4  }
  0x27   : > { %s592_s28 = sshll.u32 (%p216_p12), %s738_s12, 6  ;;  %s472_s5 = sshll.u32 (%p216_p12), %s178_s6, 4  ;;  %s473_s5 = int_to_ptr.vmem [resolvable:$true] %s472_s5 }
  0x28   : > { %s471_s4 = scalar_lea.hbm (%p216_p12), %s1008_s2, %s592_s28  ;;  %s684_s18 = scalar_lea.hbm (%p216_p12), %s1008_s2, 128 }
  0x29   : >> { %337 = vrot.lane.b32.xlu2 %v334_v21, %s752_s8 }
  0x2a   : >> { %281 = vrot.lane.b32.xlu1 %v847_v2, %s752_s8  ;;  %306 = vrot.lane.b32.xlu0 %v303_v20, %s752_s8  ;;  %v259_v20 = vsel %vm256_vm1, %v257_v58, %v258_v59 }
  0x31   : >> { %390 = vrot.lane.b32.xlu2 %v387_v24, %s753_s15 }
  0x32   : >> { %341 = vrot.lane.b32.xlu1 %v335_v22, %s752_s8  ;;  %339 = vrot.lane.b32.xlu0 %v336_v23, %s752_s8  ;;  %s474_s8 = sshll.u32 (%p216_p12), %s471_s4, 4  ;;  %s475_s8 = int_to_ptr.hbm [resolvable:$true] %s474_s8 }
  0x33   : > { %s678_s16 = sshra.s32 (%p216_p12), %s475_s8, 4  ;;  %s679_s16 = int_to_ptr.hbm [resolvable:$true] %s678_s16 }
  0x34   : > { %s680_s7 = scalar_lea.hbm (%p216_p12), %s679_s16, 64  ;;  %p685_p2 = scmp.lt.s32.totalorder (%p216_p12), %s679_s16, %s1008_s2 }
  0x35   : > { %p681_p13 = scmp.ne.s32.totalorder (%p216_p12), %s679_s16, %s680_s7  ;;  %p686_p3 = scmp.lt.s32.totalorder (%p216_p12), %s684_s18, %s680_s7 }
  0x37   : > { %p682_p0 = pnand (%p216_p12), %p681_p13, %p813_p4  ;;  %p687_p5 = por (%p216_p12), %p686_p3, %p685_p2 }
  0x39   : >> { %367 = vrot.lane.b32.xlu2 %v851_v4, %s753_s15  ;;  %p683_p1 = pneg (%p216_p12), %p682_p0 }
  0x3a   : >> { %394 = vrot.lane.b32.xlu1 %v388_v25, %s753_s15  ;;  %392 = vrot.lane.b32.xlu0 %v389_v26, %s753_s15  ;;  %v239_v26 = vmul.f32 %v234_v19, %v903_v30 }
  0x3b   : > { %p688_p6 = pnand (%p216_p12), %p687_p5, %p683_p1 }
  0x41   : >> { %425 = vrot.lane.b32.xlu2 %v422_v29, %s753_s15  ;;  %v265_v29 = vmul.f32 %v258_v59, %v224_v47 }
  0x42   : >> { %369 = vrot.lane.b32.xlu0 %v853_v5, %s753_s15  ;;  %423 = vrot.lane.b32.xlu1 %v420_v27, %s753_s15  ;;  %v264_v27 = vmul.f32 %v259_v20, %v903_v30 }
  0x4a   : >> { %427 = vrot.lane.b32.xlu0 %v421_v28, %s753_s15  ;;  %v240_v28 = vmul.f32 %v233_v57, %v224_v47  ;;  %s457_s15 = scalar_lea.sflag (%p216_p12), [#allocation3], %s176_s23 }
  0x7b   : >> { %v284_v31 = vpop.permute.xlu2 %283 }
  0x7c   : >> { %v288_v32 = vmul.f32 %v284_v31, %v903_v30 }
  0x7e   : >> { %293 = vrot.lane.b32.xlu2 %v288_v32, %s754_s20 }
  0x83   : >> { %v907_v33 = vpop.permute.xlu2 %337 }
  0x8b   : >> { %v391_v36 = vpop.permute.xlu2 %390 }
  0x8c   : >> { %v399_v62 = vmul.f32 %v391_v36, %v909_v37 }
  0x8e   : >> { %v405_v24 = vrot.slane %v399_v62, 1 }
  0x93   : >> { %v368_v45 = vpop.permute.xlu2 %367 }
  0x94   : >> { %v309_v34 = vpop.permute.xlu1 %308  ;;  %v305_v35 = vpop.permute.xlu0 %304  ;;  %v373_v48 = vmul.f32 %v368_v45, %v909_v37 }
  0x95   : >> { %v313_v38 = vmul.f32 %v305_v35, %v909_v37  ;;  %v315_v53 = vmul.f32 %v309_v34, %v224_v47  ;;  %v246_v34 = vrot.slane %v239_v26, 1  ;;  %v271_v35 = vrot.slane %v264_v27, 2 }
  0x97   : >> { %v319_v43 = vrot.slane %v313_v38, 1  ;;  %v322_v61 = vrot.slane %v315_v53, 1  ;;  %v248_v38 = vrot.slane %v240_v28, 1 }
  0x99   : >> { %v249_v45 = vsel %vm244_vm2, %v246_v34, %v248_v38 }
  0x9c   : >> { %v282_v39 = vpop.permute.xlu1 %281  ;;  %v307_v40 = vpop.permute.xlu0 %306 }
  0x9d   : >> { %v287_v41 = vmul.f32 %v282_v39, %v909_v37  ;;  %v314_v42 = vmul.f32 %v307_v40, %v903_v30  ;;  %v273_v39 = vrot.slane %v265_v29, 2 }
  0x9f   : >> { %v320_v44 = vrot.slane %v314_v42, 1  ;;  %291 = vrot.lane.b32.xlu1 %v287_v41, %s754_s20  ;;  %v426_v42 = vpop.permute.xlu2 %425 }
  0xa1   : >> { %v321_v46 = vsel %vm244_vm2, %v319_v43, %v320_v44  ;;  %v323_v23 = vsel %vm244_vm2, %v320_v44, %v322_v61  ;;  %v346_v43 = vmul.f32 %v907_v33, %v909_v37  ;;  %v226_v44 = vmul.f32 %v903_v30, %v845_v1 }
  0xa2   : >> { %324 = vrot.lane.b32.xlu0 %v321_v46, %s754_s20  ;;  %v274_v46 = vsel %vm269_vm3, %v271_v35, %v273_v39 }
  0xa4   : >> { %v342_v49 = vpop.permute.xlu1 %341  ;;  %v340_v50 = vpop.permute.xlu0 %339 }
  0xa5   : >> { %v348_v51 = vmul.f32 %v342_v49, %v224_v47  ;;  %v347_v52 = vmul.f32 %v340_v50, %v903_v30  ;;  %v253_v49 = vadd.f32 %v249_v45, %v226_v44 }
  0xa7   : >> { %v355_v54 = vrot.slane %v348_v51, 2  ;;  %v353_v55 = vrot.slane %v347_v52, 2  ;;  %377 = vrot.lane.b32.xlu1 %v373_v48, %s755_s25  ;;  %v433_v48 = vmul.f32 %v426_v42, %v903_v30  ;;  %v352_v51 = vrot.slane %v346_v43, 2 }
  0xa8   : >> { %v278_v53 = vadd.f32 %v274_v46, %v253_v49 }
  0xa9   : >> { %v356_v60 = vsel %vm269_vm3, %v353_v55, %v355_v54  ;;  %v439_v54 = vrot.slane %v433_v48, 2  ;;  %v354_v33 = vsel %vm269_vm3, %v352_v51, %v353_v55  ;;  %v225_v55 = vmul.f32 %v909_v37, %v843_v0 }
  0xaa   : >> { %359 = vrot.lane.b32.xlu0 %v356_v60, %s754_s20 }
  0xac   : >> { %v395_v63 = vpop.permute.xlu1 %394  ;;  %v393_v18 = vpop.permute.xlu0 %392 }
  0xad   : >> { %v400_v21 = vmul.f32 %v393_v18, %v903_v30  ;;  %v401_v22 = vmul.f32 %v395_v63, %v224_v47  ;;  %v238_v63 = vmul.f32 %v232_v56, %v909_v37 }
  0xaf   : >> { %v406_v25 = vrot.slane %v400_v21, 1  ;;  %326 = vrot.lane.b32.xlu1 %v323_v23, %s754_s20  ;;  %v408_v32 = vrot.slane %v401_v22, 1  ;;  %v245_v18 = vrot.slane %v238_v63, 1 }
  0xb1   : >> { %v407_v31 = vsel %vm244_vm2, %v405_v24, %v406_v25  ;;  %v409_v41 = vsel %vm244_vm2, %v406_v25, %v408_v32  ;;  %v247_v19 = vsel %vm244_vm2, %v245_v18, %v246_v34 }
  0xb2   : >> { %410 = vrot.lane.b32.xlu0 %v407_v31, %s755_s25  ;;  %v252_v21 = vadd.f32 %v247_v19, %v225_v55 }
  0xb4   : >> { %v370_v36 = vpop.permute.xlu0 %369  ;;  %v424_v50 = vpop.permute.xlu1 %423 }
  0xb5   : >> { %v374_v40 = vmul.f32 %v370_v36, %v903_v30  ;;  %v432_v59 = vmul.f32 %v424_v50, %v909_v37 }
  0xb7   : >> { %379 = vrot.lane.b32.xlu2 %v374_v40, %s755_s25  ;;  %412 = vrot.lane.b32.xlu1 %v409_v41, %s755_s25  ;;  %v438_v62 = vrot.slane %v432_v59, 2 }
  0xb9   : >> { %v440_v30 = vsel %vm269_vm3, %v438_v62, %v439_v54 }
  0xbc   : >> { %v428_v52 = vpop.permute.xlu0 %427 }
  0xbd   : >> { %v434_v57 = vmul.f32 %v428_v52, %v224_v47  ;;  %v263_v47 = vmul.f32 %v257_v58, %v909_v37 }
  0xbf   : >> { %v441_v60 = vrot.slane %v434_v57, 2  ;;  %357 = vrot.lane.b32.xlu2 %v354_v33, %s754_s20  ;;  %v270_v20 = vrot.slane %v263_v47, 2 }
  0xc1   : >> { %v442_v61 = vsel %vm269_vm3, %v439_v54, %v441_v60  ;;  %v272_v22 = vsel %vm269_vm3, %v270_v20, %v271_v35 }
  0xc2   : >> { %445 = vrot.lane.b32.xlu0 %v442_v61, %s755_s25  ;;  %v277_v23 = vadd.f32 %v272_v22, %v252_v21 }
  0xc7   : >> { %443 = vrot.lane.b32.xlu2 %v440_v30, %s755_s25 }
  0xd8   : >> { %v294_v24 = vpop.permute.xlu2 %293 }
  0xd9   : >> { %v298_v35 = vadd.f32 %v294_v24, %v278_v53 }
 0x111   : >> { %v380_v25 = vpop.permute.xlu2 %379  ;;  %v292_v26 = vpop.permute.xlu1 %291 }
 0x112   : >> { %v297_v56 = vadd.f32 %v292_v26, %v277_v23 }
 0x114   : >> { %v325_v27 = vpop.permute.xlu0 %324 }
 0x115   : >> { %v330_v31 = vadd.f32 %v325_v27, %v297_v56 }
 0x119   : >> { %v358_v28 = vpop.permute.xlu2 %357  ;;  %v378_v29 = vpop.permute.xlu1 %377 }
 0x11a   : >> { %v363_v32 = vadd.f32 %v358_v28, %v330_v31 }
 0x11c   : >> { %v360_v58 = vpop.permute.xlu0 %359  ;;  %v383_v37 = vadd.f32 %v378_v29, %v363_v32 }
 0x121   : >> { %v444_v38 = vpop.permute.xlu2 %443  ;;  %v327_v39 = vpop.permute.xlu1 %326 }
 0x122   : >> { %v331_v41 = vadd.f32 %v327_v39, %v298_v35 }
 0x124   : >> { %v411_v34 = vpop.permute.xlu0 %410  ;;  %v364_v42 = vadd.f32 %v360_v58, %v331_v41 }
 0x125   : >> { %v416_v36 = vadd.f32 %v411_v34, %v383_v37 }
 0x126   : >> { %v384_v44 = vadd.f32 %v380_v25, %v364_v42 }
 0x127   : >> { %v449_v40 = vadd.f32 %v444_v38, %v416_v36 }
 0x129   : >> { %454 = vst.msk [vmem:[%s452_s27] sm:$0xff] %vm453_vm4, %v449_v40  ;;  %v413_v43 = vpop.permute.xlu1 %412 }
 0x12a   : >> { %v417_v45 = vadd.f32 %v413_v43, %v384_v44 }
 0x133   : > { %218 = sbr.rel (!%p216_p12) target bundleno = 32 (0x20), region = 75 }
 0x134   : >> { %v446_v46 = vpop.permute.xlu0 %445 }
 0x135   : >> { %v450_v48 = vadd.f32 %v446_v46, %v417_v45 }
 0x137   : >> { %455 = vst.msk [vmem:[%s452_s27 + $0x8] sm:$0xff] %vm453_vm4, %v450_v48 }
 0x138   : > { %691 = shalt.err (!%p688_p6)
}
 0x139   : > { %s756_s23 = smov 128   ;;  %s757_s24 = smov 8  }
 0x13a   : > { %595 = dma.vmem_to_hbm [thread:$0]  (%p813_p4), %s473_s5, 1024, %s475_s8, %s457_s15, %s756_s23, %s756_s23, %s757_s24  }
 0x13b PF: > { %p601_p7 = scmp.ge.s32.totalorder %s746_s14, 2  ;;  %s489_s6 = sand.u32 1, %s726_s9  }
 0x13c   : > { %s490_s26 = scalar_lea.sflag [#allocation3], %s489_s6 }
 0x13d   : > { %p598_p9 = pnand %p601_p7, %p820_p8 }
 0x13f   : > { %p599_p10 = pneg %p598_p9 }
 0x141   : > { %721 = dma.done.wait (%p599_p10), %s490_s26, 1024  }
 0x142   : > { %723 = vsyncadd (%p599_p10), %s490_s26, 4294966272  ;;  %s15_s14 = sadd.s32 1, %s746_s14   ;;  %s1011_s9 = smov %s730_s10 }
 0x143   : > { %p12_p11 = scmp.ge.s32.totalorder %s15_s14, 4   ;;  %s1012_s10 = smov %s734_s11 }
 0x144   : > { %s1013_s11 = smov %s826_s22  ;;  %s1014_s12 = smov %s742_s13 }
 0x145   : > { %s1015_s13 = smov %s1017_s17  ;;  %14 = sbr.rel (!%p12_p11) target bundleno = 4 (0x4), region = 86 }
 0x14a   :  { %496 = vsyncpa [#allocation3], 1 }
 0x14b   :  { %498 = vsyncpa [#allocation3 + $0x1], 1 }

</bundles_post_ra>
